<compile_context>
chip_gen: v6e
topology: v6e:2x2x1
jax: 0.10.0
libtpu: 0.0.40
codegen_flags: <defaults>
</compile_context>

<pallas_src>
import functools

import jax
import jax.numpy as jnp
from jax.experimental import pallas as pl
from jax.experimental.pallas import tpu as pltpu


# --------------------------------------------------------------------------
# pltpu.roll direction probe (run once, before the fused kernel is traced)
# --------------------------------------------------------------------------
_ROLL_SIGN = None


def _probe_roll_sign():
    """+1 if pltpu.roll follows the jnp.roll convention (positive shift moves
    data toward higher indices), -1 otherwise.

    The conv taps below need `shifted[p] == x[p + off]` exactly; one tiny
    (8,128) probe kernel pins that invariant independent of the lowering's
    rotate convention / jax version.
    """
    global _ROLL_SIGN
    if _ROLL_SIGN is None:
        def probe(x_ref, o_ref):
            o_ref[...] = pltpu.roll(x_ref[...], 1, axis=1)

        x = jnp.tile(jnp.arange(128, dtype=jnp.float32)[None, :], (8, 1))
        r = pl.pallas_call(
            probe, out_shape=jax.ShapeDtypeStruct((8, 128), jnp.float32))(x)
        _ROLL_SIGN = 1 if float(r[0, 1]) == 0.0 else -1
    return _ROLL_SIGN


# --------------------------------------------------------------------------
# Fused Pallas kernel
# --------------------------------------------------------------------------
def _conv3x3_taps(x_flat, w_ref, b_ref, H, W, sign):
    """3x3 'same' conv in a channels-on-sublanes (C, H*W) layout.

    out[o, p] = b[o] + sum_{t=(dh,dw)} sum_c w[t, o, c] * x[c, p + dh*W + dw]
    with zeros outside the HxW image.  Each tap: lane rotation + boundary
    mask (VPU/XLU) + one small bf16 MXU matmul accumulated in f32.
    """
    HW = H * W
    c_out = w_ref.shape[1]

    pidx = jax.lax.broadcasted_iota(jnp.int32, x_flat.shape, 1)  # flat spatial
    col = pidx % W
    row_lo, row_hi = pidx >= W, pidx < HW - W      # h+dh stays inside [0, H)
    col_lo, col_hi = col >= 1, col < W - 1         # w+dw stays inside [0, W)

    acc = jnp.zeros((c_out, HW), jnp.float32)
    t = 0
    for dh in (-1, 0, 1):
        for dw in (-1, 0, 1):
            off = dh * W + dw
            if off == 0:
                shifted = x_flat
            else:
                shifted = pltpu.roll(x_flat, (-sign * off) % HW, axis=1)
            conds = []
            if dh == -1:
                conds.append(row_lo)
            elif dh == 1:
                conds.append(row_hi)
            if dw == -1:
                conds.append(col_lo)
            elif dw == 1:
                conds.append(col_hi)
            if conds:
                m = conds[0]
                for extra in conds[1:]:
                    m = jnp.logical_and(m, extra)
                shifted = jnp.where(m, shifted, 0.0)
            acc = acc + jnp.dot(w_ref[t], shifted.astype(w_ref.dtype),
                                preferred_element_type=jnp.float32)
            t += 1
    return acc + b_ref[...]


def _fused_forward_kernel(x_ref, s1_ref, sh_ref, we_ref, be_ref, wg_ref,
                          bg_ref, o_ref, *, H, W, sign):
    # E(x): 3x3 conv + ReLU -> skips; stays in vregs/VMEM, never hits HBM.
    skips = jnp.maximum(
        _conv3x3_taps(x_ref[...], we_ref, be_ref, H, W, sign), 0.0)

    # Modulation fused into the epilogue: per-sample (F,1) columns broadcast
    # over the H*W spatial lanes (pure VPU, hides under the MXU).
    mod = skips * s1_ref[...] + sh_ref[...]

    # G: 3x3 conv + tanh, written as a lane-dense (C_out, H*W) slab (== NCHW).
    img = jnp.tanh(_conv3x3_taps(mod, wg_ref, bg_ref, H, W, sign))
    o_ref[...] = img.astype(o_ref.dtype)


# --------------------------------------------------------------------------
# Wrapper (JAX glue is only free reshapes + the tiny style dense)
# --------------------------------------------------------------------------
def wrapper_forward(params, z, x, c, *, roll_sign=1):
    """Wrapper.forward(z, x, c): skips = E(x); return G(z, c, imgs=skips)."""
    B, c_in, H, W = x.shape
    HW = H * W
    feat = params["e_b"].shape[0]
    c_out = params["g_b"].shape[0]

    # NCHW -> (B, C, H*W): free reshape; spatial goes on the 128-lane axis.
    x_flat = x.reshape(B, c_in, HW)

    # Style dense in plain XLA (<1 KFLOP - a dedicated pallas_call is pure
    # launch overhead).  Passed to the kernel as per-sample (F,1) columns.
    zc = jnp.concatenate([z, c], axis=-1)
    style = zc @ params["g_style_w"] + params["g_style_b"]          # (B, 2F)
    scale1 = (1.0 + style[:, :feat]).reshape(B, feat, 1)
    shift = style[:, feat:].reshape(B, feat, 1)

    kernel = functools.partial(_fused_forward_kernel, H=H, W=W, sign=roll_sign)
    img = pl.pallas_call(
        kernel,
        out_shape=jax.ShapeDtypeStruct((B, c_out, HW), jnp.float32),
        grid_spec=pltpu.PrefetchScalarGridSpec(
            num_scalar_prefetch=0,
            grid=(B,),                                   # one sample per step
            in_specs=[
                pl.BlockSpec((None, c_in, HW), lambda b: (b, 0, 0)),   # x
                pl.BlockSpec((None, feat, 1), lambda b: (b, 0, 0)),    # 1+scale
                pl.BlockSpec((None, feat, 1), lambda b: (b, 0, 0)),    # shift
                pl.BlockSpec((9, feat, c_in), lambda b: (0, 0, 0)),    # E w
                pl.BlockSpec((feat, 1), lambda b: (0, 0)),             # E b
                pl.BlockSpec((9, c_out, feat), lambda b: (0, 0, 0)),   # G w
                pl.BlockSpec((c_out, 1), lambda b: (0, 0)),            # G b
            ],
            out_specs=pl.BlockSpec((None, c_out, HW), lambda b: (b, 0, 0)),
        ),
        compiler_params=pltpu.CompilerParams(
            # One sample per TensorCore on v7x megacore; no-op on v5e/v6e.
            dimension_semantics=("parallel",),
            # Per-sample working set (acts + all weights) is < 64 KiB; an
            # explicit limit keeps headroom on every generation incl. v7x.
            vmem_limit_bytes=16 * 1024 * 1024,
        ),
    )(x_flat, scale1, shift,
      params["e_w"], params["e_b"], params["g_w"], params["g_b"])

    # (B, C_out, H*W) is already NCHW up to a free reshape - no transpose.
    return img.reshape(B, c_out, H, W)


# --------------------------------------------------------------------------
# Pure-JAX reference (explicit pad + slice conv, same bf16 rounding)
# --------------------------------------------------------------------------
def reference_forward(params, z, x, c):
    B, _, H, W = x.shape
    feat = params["e_b"].shape[0]

    def conv3x3(x_bchw, w_taps, b):
        xp = jnp.pad(x_bchw, ((0, 0), (0, 0), (1, 1), (1, 1)))
        xp = xp.astype(jnp.bfloat16).astype(jnp.float32)   # match MXU inputs
        w = w_taps.astype(jnp.float32)
        out = jnp.zeros((B, w_taps.shape[1], H, W), jnp.float32)
        t = 0
        for dh in (-1, 0, 1):
            for dw in (-1, 0, 1):
                xs = xp[:, :, 1 + dh:1 + dh + H, 1 + dw:1 + dw + W]
                out = out + jnp.einsum("oc,bchw->bohw", w[t], xs)
                t += 1
        return out + b.reshape(1, -1, 1, 1)

    skips = jax.nn.relu(conv3x3(x, params["e_w"], params["e_b"]))
    zc = jnp.concatenate([z, c], axis=-1)
    style = zc @ params["g_style_w"] + params["g_style_b"]
    scale = style[:, :feat].reshape(B, feat, 1, 1)
    shift = style[:, feat:].reshape(B, feat, 1, 1)
    mod = skips * (1.0 + scale) + shift
    return jnp.tanh(conv3x3(mod, params["g_w"], params["g_b"]))


# --------------------------------------------------------------------------
# Params
# --------------------------------------------------------------------------
def init_params(key, c_in, feat, z_dim, c_dim, c_out):
    k = jax.random.split(key, 6)
    n = jax.random.normal
    return {
        # 3x3 conv weights, per-tap (9, C_out, C_in); bf16 feeds the MXU at
        # full rate on v6e/v7x (f32 accumulation inside the kernel).
        "e_w": (0.1 * n(k[0], (9, feat, c_in), jnp.float32)).astype(jnp.bfloat16),
        "e_b": 0.1 * n(k[1], (feat, 1), jnp.float32),
        "g_style_w": 0.1 * n(k[2], (z_dim + c_dim, 2 * feat), jnp.float32),
        "g_style_b": 0.1 * n(k[3], (2 * feat,), jnp.float32),
        "g_w": (0.1 * n(k[4], (9, c_out, feat), jnp.float32)).astype(jnp.bfloat16),
        "g_b": 0.1 * n(k[5], (c_out, 1), jnp.float32),
    }


# --------------------------------------------------------------------------
# main
# --------------------------------------------------------------------------
if __name__ == "__main__":
    B, C_IN, H, W = 2, 4, 16, 16
    Z_DIM, C_DIM, FEAT, C_OUT = 8, 4, 8, 4

    key = jax.random.PRNGKey(0)
    kx, kz, kc, kp = jax.random.split(key, 4)
    x = jax.random.normal(kx, (B, C_IN, H, W), jnp.float32)  # NCHW like PyTorch
    z = jax.random.normal(kz, (B, Z_DIM), jnp.float32)
    c = jax.random.normal(kc, (B, C_DIM), jnp.float32)
    params = init_params(kp, C_IN, FEAT, Z_DIM, C_DIM, C_OUT)

    sign = _probe_roll_sign()                 # one-time probe, before tracing
    fwd = jax.jit(functools.partial(wrapper_forward, roll_sign=sign))
    out = jax.block_until_ready(fwd(params, z, x, c))

    assert out.shape == (B, C_OUT, H, W), out.shape
    assert bool(jnp.all(jnp.isfinite(out)))

    ref = jax.block_until_ready(jax.jit(reference_forward)(params, z, x, c))
    err = float(jnp.max(jnp.abs(out - ref)))
    assert err < 1e-2, f"max |pallas - reference| = {err}"
    print("KERNEL_OK")
</pallas_src>

<mosaic_0001>
module attributes {stable_mosaic.version = 11 : i64} {
  func.func @probe(%arg0: memref<8x128xf32, #tpu.memory_space<vmem>>, %arg1: memref<8x128xf32, #tpu.memory_space<vmem>>) attributes {dimension_semantics = [], scalar_prefetch = 0 : i64, scratch_operands = 0 : i64, tpu.core_type = #tpu.core_type<tc>} {
    %c0 = arith.constant 0 : index
    %c0_0 = arith.constant 0 : index
    %0 = vector.load %arg0[%c0, %c0_0] : memref<8x128xf32, #tpu.memory_space<vmem>>, vector<8x128xf32>
    %c1_i32 = arith.constant 1 : i32
    %1 = tpu.dynamic_rotate %0 by %c1_i32 dim 1 : vector<8x128xf32>, i32 -> vector<8x128xf32>
    %c0_1 = arith.constant 0 : index
    %c0_2 = arith.constant 0 : index
    %2 = vector.load %arg1[%c0_1, %c0_2] : memref<8x128xf32, #tpu.memory_space<vmem>>, vector<8x128xf32>
    tpu.vector_store %arg1[%c0_1, %c0_2], %1 {strides = array<i32>} : memref<8x128xf32, #tpu.memory_space<vmem>>, vector<8x128xf32>,
    return
  }
}

</mosaic_0001>

<bundles_post_ra>
// kernel: tpu_custom_call.1
= control target key start
LH: loop header
LB: loop body
LE: loop exit
PB: predicated region body
PF: predicated region fallthrough
CT: control target
= control target key end

     0   :  { %6 = vsyncpa [#allocation3], 0  ;;  %s106_s0 = inlined_call_operand.hbm [shape: f32[8,128], index: 0, kind: input, shape index: {}]   ;;  %s107_s1 = inlined_call_operand.hbm [shape: f32[8,128], index: 1, kind: output, shape index: {}]  }
   0x1   :  { %7 = vsyncpa [#allocation4], 0  ;;  %s87_s6 = smov [#allocation2]  }
   0x2   :  { %s14_s7 = sshll.u32 %s87_s6, 4  ;;  %s15_s7 = int_to_ptr.vmem [resolvable:$true] %s14_s7 }
   0x3   :  { %s51_s8 = scalar_lea.vmem %s15_s7, 128  ;;  %p56_p1 = scmp.lt.s32.totalorder %s15_s7, %s15_s7 }
   0x4   :  { %p52_p0 = scmp.ne.s32.totalorder %s15_s7, %s51_s8  ;;  %p57_p2 = scmp.lt.s32.totalorder %s51_s8, %s51_s8 }
   0x6   :  { %p58_p3 = por %p57_p2, %p56_p1 }
   0x8   :  { %p59_p4 = pnand %p58_p3, %p52_p0 }
   0xa   :  { %62 = shalt.err (!%p59_p4)
}
   0xb   :  { %17 = dma.hbm_to_vmem [thread:$0]  %s106_s0, 128, %s15_s7, [#allocation3]  }
   0xc   :  { %83 = dma.done.wait [#allocation3], 128  }
   0xd   :  { %84 = vsyncadd [#allocation3], 4294967168  ;;  %v21_v0 = vld [vmem:[#allocation2] sm:$0xff]  ;;  %s88_s11 = smov 1   ;;  %s89_s12 = smov [#allocation5]  }
   0xe   :  { %22 = vrot.lane.b32.xlu0 %v21_v0, %s88_s11  ;;  %s31_s13 = sshll.u32 %s89_s12, 4  ;;  %s32_s13 = int_to_ptr.vmem [resolvable:$true] %s31_s13 }
   0xf   :  { %s63_s14 = scalar_lea.vmem %s32_s13, 128  ;;  %p68_p6 = scmp.lt.s32.totalorder %s32_s13, %s32_s13 }
  0x10   :  { %p64_p5 = scmp.ne.s32.totalorder %s32_s13, %s63_s14  ;;  %p69_p7 = scmp.lt.s32.totalorder %s63_s14, %s63_s14 }
  0x12   :  { %p70_p8 = por %p69_p7, %p68_p6 }
  0x14   :  { %p71_p9 = pnand %p70_p8, %p64_p5 }
  0x80   :  { %v23_v1 = vpop.permute.xlu0 %22 }
  0x81   :  { %24 = vst [vmem:[#allocation5] sm:$0xff] %v23_v1 }
  0x82   :  { %74 = shalt.err (!%p71_p9)
}
  0x83   :  { %34 = dma.vmem_to_hbm [thread:$0]  %s32_s13, 128, %s107_s1, [#allocation4]  }
  0x84   :  { %85 = dma.done.wait [#allocation4], 128  }
  0x85   :  { %86 = vsyncadd [#allocation4], 4294967168 }
  0x86   :  { %38 = vsyncpa [#allocation3], 1 }
  0x87   :  { %39 = vsyncpa [#allocation4], 1 }

</bundles_post_ra>
